<compile_context>
chip_gen: v7x
topology: tpu7x:2x2x1
jax: 0.10.0
libtpu: 0.0.40
codegen_flags: <defaults>
</compile_context>

<pallas_src>
import functools

import jax
import jax.numpy as jnp
from jax.experimental import pallas as pl
from jax.experimental.pallas import tpu as pltpu

LANES = 128
_VMEM_LIMIT_BYTES = 32 * 1024 * 1024   # explicit; safe on v5e/v6e/v7x


def _round_up(x, m):
    return -(-x // m) * m


def _min_sublanes(dtype):
    # minimal second-to-last tile dim by element size: f32->8, bf16->16, i8->32
    return {1: 32, 2: 16}.get(jnp.dtype(dtype).itemsize, 8)


def _tiling(width, max_block_rows, sublanes, min_split_rows=512):
    """1-D width -> lane-dense [rows_pad, 128] tiling.

    Rows are padded only to `sublanes` per block (waste < n_blocks*sublanes
    rows).  When the problem is large enough we force >=2 row blocks so the
    'parallel' axis can shard across v7x's two TensorCores.
    Returns (rows_pad, block_rows, n_blocks)."""
    rows = _round_up(max(width, 1), LANES) // LANES
    rows_s = _round_up(rows, sublanes)
    n_blocks = -(-rows_s // max_block_rows)
    if n_blocks == 1 and rows_s >= 2 * min_split_rows:
        n_blocks = 2                      # dual-TensorCore sharding on v7x
    block_rows = _round_up(-(-rows_s // n_blocks), sublanes)
    rows_pad = n_blocks * block_rows
    return rows_pad, block_rows, n_blocks


def _to_tiles(a, rows_pad):
    """(..., width) -> (..., rows_pad, 128).  Pure reshape (no extra HBM pass)
    when width == rows_pad*128; otherwise a single pad."""
    width = a.shape[-1]
    pad = rows_pad * LANES - width
    if pad:
        a = jnp.pad(a, [(0, 0)] * (a.ndim - 1) + [(0, pad)])
    return a.reshape(a.shape[:-1] + (rows_pad, LANES))


def _from_tiles(a, width):
    """(..., rows_pad, 128) -> (..., width)."""
    a = a.reshape(a.shape[:-2] + (-1,))
    return a if a.shape[-1] == width else a[..., :width]


# ----------------------------------------------------------------------------
# LIF update (traced inside the kernels); recurrence carried in f32.
# ----------------------------------------------------------------------------
def _lif_step(v, x, v_rest, v_thresh, v_decay, reset_by_sub, non_spiking,
              out_dtype):
    v = v * v_decay + x.astype(jnp.float32)
    if non_spiking:
        return v.astype(out_dtype), v
    spiked = v > v_thresh
    if reset_by_sub:
        v_new = jnp.where(spiked, v - (v_thresh - v_rest), v)
    else:
        # literal torch code: v -= spiked * (v + v_rest)
        v_new = jnp.where(spiked, v - (v + v_rest), v)
    return spiked.astype(out_dtype), v_new


# ----------------------------------------------------------------------------
# single forward() step:  (x, v) -> (out, v_new)
# (Per-call driving re-reads/re-writes v from HBM every step; prefer
#  make_spiking_seq / lax.scan for whole sequences.)
# ----------------------------------------------------------------------------
def make_spiking_step(width, v_rest=0.0, v_thresh=1.0, v_decay=0.9,
                      reset_by_sub=True, non_spiking=False,
                      max_block_rows=2048, spike_dtype=jnp.float32,
                      donate_state=True):
    v_rest, v_thresh, v_decay = float(v_rest), float(v_thresh), float(v_decay)
    sub = max(8, _min_sublanes(spike_dtype))
    rows_pad, block_rows, n_blocks = _tiling(width, max_block_rows, sub)

    def kernel(x_ref, v_ref, out_ref, v_out_ref):
        out, v_new = _lif_step(v_ref[...], x_ref[...], v_rest, v_thresh,
                               v_decay, reset_by_sub, non_spiking,
                               out_ref.dtype)
        out_ref[...] = out
        v_out_ref[...] = v_new

    spec = pl.BlockSpec((block_rows, LANES), lambda i: (i, 0))
    call = pl.pallas_call(
        kernel,
        out_shape=(jax.ShapeDtypeStruct((rows_pad, LANES), spike_dtype),
                   jax.ShapeDtypeStruct((rows_pad, LANES), jnp.float32)),
        grid_spec=pl.GridSpec(grid=(n_blocks,),
                              in_specs=[spec, spec],
                              out_specs=(spec, spec)),
        input_output_aliases={1: 1},   # v state input reuses v_new's buffer
        compiler_params=pltpu.CompilerParams(
            dimension_semantics=("parallel",),
            vmem_limit_bytes=_VMEM_LIMIT_BYTES),
    )

    donate = (1,) if donate_state else ()

    @functools.partial(jax.jit, donate_argnums=donate)
    def _step(x, v):
        out2, v2 = call(_to_tiles(x, rows_pad),
                        _to_tiles(v.astype(jnp.float32), rows_pad))
        return _from_tiles(out2, width), _from_tiles(v2, width)

    def step(x, v):
        return _step(x, v)

    step.padded_width = rows_pad * LANES
    return step


# ----------------------------------------------------------------------------
# fused T-step recurrence:  (xs[T, width], v0[width]) -> (outs[T, width], vT)
# v stays resident in VMEM across the whole time sweep; Tc timesteps are
# processed per grid step to amortize fixed per-step overhead.
# ----------------------------------------------------------------------------
def make_spiking_seq(width, num_steps, v_rest=0.0, v_thresh=1.0, v_decay=0.9,
                     reset_by_sub=True, non_spiking=False,
                     max_block_rows=2048, max_t_block=8,
                     max_rows_per_step=4096,
                     spike_dtype=jnp.float32, donate_state=True):
    v_rest, v_thresh, v_decay = float(v_rest), float(v_thresh), float(v_decay)
    sub = max(8, _min_sublanes(spike_dtype))
    rows_pad, block_rows, n_blocks = _tiling(width, max_block_rows, sub)

    # Timesteps per grid step: largest divisor of num_steps that is
    # <= max_t_block and keeps the per-step x/out blocks <= max_rows_per_step
    # rows (so double-buffered streams stay well inside scoped VMEM).
    cap = max(1, min(max_t_block, max_rows_per_step // block_rows))
    t_block = 1
    for d in range(1, num_steps + 1):
        if num_steps % d == 0 and d <= cap:
            t_block = d
    n_tblocks = num_steps // t_block

    def kernel(x_ref, v0_ref, out_ref, v_ref):
        @pl.when(pl.program_id(1) == 0)
        def _():
            v_ref[...] = v0_ref[...]      # load initial state once per row block

        v = v_ref[...]
        for tt in range(t_block):         # small static unrolled time chunk
            out, v = _lif_step(v, x_ref[tt], v_rest, v_thresh, v_decay,
                               reset_by_sub, non_spiking, out_ref.dtype)
            out_ref[tt] = out
        # Revisited output block: v stays in VMEM across the whole T axis and
        # is written back to HBM only when the row block changes.
        v_ref[...] = v

    x_spec = pl.BlockSpec((t_block, block_rows, LANES), lambda i, t: (t, i, 0))
    out_spec = pl.BlockSpec((t_block, block_rows, LANES), lambda i, t: (t, i, 0))
    v_spec = pl.BlockSpec((block_rows, LANES), lambda i, t: (i, 0))

    call = pl.pallas_call(
        kernel,
        out_shape=(jax.ShapeDtypeStruct((num_steps, rows_pad, LANES),
                                        spike_dtype),
                   jax.ShapeDtypeStruct((rows_pad, LANES), jnp.float32)),
        grid_spec=pltpu.PrefetchScalarGridSpec(
            num_scalar_prefetch=0,
            grid=(n_blocks, n_tblocks),
            in_specs=[x_spec, v_spec],
            out_specs=(out_spec, v_spec)),
        input_output_aliases={1: 1},   # v0 input reuses the v output buffer
        compiler_params=pltpu.CompilerParams(
            dimension_semantics=("parallel", "arbitrary"),
            vmem_limit_bytes=_VMEM_LIMIT_BYTES),
    )

    donate = (1,) if donate_state else ()

    @functools.partial(jax.jit, donate_argnums=donate)
    def run_tiled(xs_tiled, v0_tiled):
        """Pre-padded layout: xs_tiled [T, rows_pad, 128] (any float dtype),
        v0_tiled [rows_pad, 128] f32.  No pad / slice passes at all."""
        return call(xs_tiled, v0_tiled)

    @functools.partial(jax.jit, donate_argnums=donate)
    def _run_flat(xs, v0):
        out2, v2 = call(_to_tiles(xs, rows_pad),
                        _to_tiles(v0.astype(jnp.float32), rows_pad))
        return _from_tiles(out2, width), _from_tiles(v2, width)

    def run(xs, v0):
        return _run_flat(xs, v0)

    run.tiled = run_tiled
    run.padded_width = rows_pad * LANES
    return run


# ----------------------------------------------------------------------------
# pure-JAX reference (mirrors the torch module)
# ----------------------------------------------------------------------------
def spiking_reference_seq(xs, v, v_rest=0.0, v_thresh=1.0, v_decay=0.9,
                          reset_by_sub=True, non_spiking=False):
    outs = []
    for t in range(xs.shape[0]):
        v = v * v_decay + xs[t]
        if non_spiking:
            outs.append(v)
            continue
        spiked = (v > v_thresh).astype(jnp.float32)
        if reset_by_sub:
            v = v - spiked * (v_thresh - v_rest)
        else:
            v = v - spiked * (v + v_rest)
        outs.append(spiked)
    return jnp.stack(outs), v


if __name__ == "__main__":
    key = jax.random.PRNGKey(0)
    k1, k2, k3 = jax.random.split(key, 3)
    v_rest, v_thresh, v_decay = 0.0, 1.0, 0.9

    # ---- 1) width not a multiple of 128 (exercises padding), f32 spikes ----
    width, T = 300, 8
    xs = jax.random.uniform(k1, (T, width), jnp.float32, minval=0.0, maxval=2.0)
    ref_spk, ref_v = spiking_reference_seq(
        xs, jnp.full((width,), v_rest, jnp.float32), v_rest, v_thresh, v_decay)

    seq = make_spiking_seq(width, T, v_rest, v_thresh, v_decay)
    spk, v_fin = jax.block_until_ready(
        seq(xs, jnp.full((width,), v_rest, jnp.float32)))
    assert spk.shape == (T, width) and v_fin.shape == (width,)
    assert jnp.array_equal(spk, ref_spk), "fused: spike mismatch"
    assert jnp.allclose(v_fin, ref_v, atol=1e-5, rtol=1e-5), "fused: v mismatch"

    # single-step kernel driven one forward() call at a time
    # (for real workloads prefer make_spiking_seq: v stays resident in VMEM)
    step = make_spiking_step(width, v_rest, v_thresh, v_decay)
    v = jnp.full((width,), v_rest, jnp.float32)
    outs = []
    for t in range(T):
        s, v = step(xs[t], v)          # v is donated each call
        outs.append(s)
    outs = jax.block_until_ready(jnp.stack(outs))
    v = jax.block_until_ready(v)
    assert jnp.array_equal(outs, ref_spk), "step: spike mismatch"
    assert jnp.allclose(v, ref_v, atol=1e-5, rtol=1e-5), "step: v mismatch"

    # non_spiking=True returns the membrane potential directly
    ns_step = make_spiking_step(width, v_rest, v_thresh, v_decay,
                                non_spiking=True)
    expected_ns = v_rest * v_decay + xs[0]
    out_ns, v_ns = jax.block_until_ready(
        ns_step(xs[0], jnp.full((width,), v_rest, jnp.float32)))
    assert jnp.allclose(out_ns, expected_ns, atol=1e-6)
    assert jnp.allclose(out_ns, v_ns, atol=1e-6)

    # ---- 2) width multiple of 128 (pure-reshape path), reset_by_sub=False ---
    width2 = 1024
    xs2 = jax.random.uniform(k2, (T, width2), jnp.float32, minval=0.0, maxval=2.0)
    ref2_spk, ref2_v = spiking_reference_seq(
        xs2, jnp.full((width2,), v_rest, jnp.float32), v_rest, v_thresh,
        v_decay, reset_by_sub=False)
    seq2 = make_spiking_seq(width2, T, v_rest, v_thresh, v_decay,
                            reset_by_sub=False)
    spk2, v2f = jax.block_until_ready(
        seq2(xs2, jnp.full((width2,), v_rest, jnp.float32)))
    assert jnp.array_equal(spk2, ref2_spk), "reset_by_sub=False: spike mismatch"
    assert jnp.allclose(v2f, ref2_v, atol=1e-5, rtol=1e-5)

    # ---- 3) tiled entry point, bf16 activations + bf16 spike output --------
    width3 = 4096
    xs3 = jax.random.uniform(k3, (T, width3), jnp.float32,
                             minval=0.0, maxval=2.0).astype(jnp.bfloat16)
    seq3 = make_spiking_seq(width3, T, v_rest, v_thresh, v_decay,
                            spike_dtype=jnp.bfloat16)
    rows_pad3 = seq3.padded_width // LANES
    xs3_t = _to_tiles(xs3, rows_pad3)                                   # view-like reshape
    v03_t = _to_tiles(jnp.full((width3,), v_rest, jnp.float32), rows_pad3)
    spk3_t, v3_t = jax.block_until_ready(seq3.tiled(xs3_t, v03_t))
    spk3 = _from_tiles(spk3_t, width3)
    v3 = _from_tiles(v3_t, width3)
    ref3_spk, ref3_v = spiking_reference_seq(
        xs3.astype(jnp.float32), jnp.full((width3,), v_rest, jnp.float32),
        v_rest, v_thresh, v_decay)
    assert jnp.array_equal(spk3.astype(jnp.float32), ref3_spk), "bf16: spike mismatch"
    assert jnp.allclose(v3, ref3_v, atol=1e-5, rtol=1e-5), "bf16: v mismatch"

    print("KERNEL_OK")
</pallas_src>

<mosaic_0001>
module attributes {stable_mosaic.version = 11 : i64} {
  func.func @kernel(%arg0: i32, %arg1: i32, %arg2: memref<8x8x128xf32, #tpu.memory_space<vmem>>, %arg3: memref<8x128xf32, #tpu.memory_space<vmem>>, %arg4: memref<8x8x128xf32, #tpu.memory_space<vmem>>, %arg5: memref<8x128xf32, #tpu.memory_space<vmem>>) attributes {dimension_semantics = [#tpu.dimension_semantics<parallel>, #tpu.dimension_semantics<arbitrary>], iteration_bounds = array<i64: 1, 1>, scalar_prefetch = 0 : i64, scratch_operands = 0 : i64, tpu.core_type = #tpu.core_type<tc>, window_params = [{transform_indices = @transform_0, window_bounds = array<i64: 8, 8, 128>}, {transform_indices = @transform_1, window_bounds = array<i64: 8, 128>}, {transform_indices = @transform_2, window_bounds = array<i64: 8, 8, 128>}, {transform_indices = @transform_3, window_bounds = array<i64: 8, 128>}]} {
    %c0_i32 = arith.constant 0 : i32
    %0 = arith.cmpi eq, %arg1, %c0_i32 : i32
    %1 = arith.extui %0 : i1 to i32
    %c0_i32_0 = arith.constant 0 : i32
    %2 = arith.cmpi ne, %1, %c0_i32_0 : i32
    scf.if %2 {
      %c0_68 = arith.constant 0 : index
      %c0_69 = arith.constant 0 : index
      %125 = vector.load %arg3[%c0_68, %c0_69] : memref<8x128xf32, #tpu.memory_space<vmem>>, vector<8x128xf32>
      %c0_70 = arith.constant 0 : index
      %c0_71 = arith.constant 0 : index
      %126 = vector.load %arg5[%c0_70, %c0_71] : memref<8x128xf32, #tpu.memory_space<vmem>>, vector<8x128xf32>
      tpu.vector_store %arg5[%c0_70, %c0_71], %125 {strides = array<i32>} : memref<8x128xf32, #tpu.memory_space<vmem>>, vector<8x128xf32>,
    } else {
    }
    %c0 = arith.constant 0 : index
    %c0_1 = arith.constant 0 : index
    %3 = vector.load %arg5[%c0, %c0_1] : memref<8x128xf32, #tpu.memory_space<vmem>>, vector<8x128xf32>
    %c0_2 = arith.constant 0 : index
    %c0_3 = arith.constant 0 : index
    %c0_4 = arith.constant 0 : index
    %4 = vector.load %arg2[%c0_2, %c0_3, %c0_4] : memref<8x8x128xf32, #tpu.memory_space<vmem>>, vector<1x8x128xf32>
    %5 = vector.shape_cast %4 : vector<1x8x128xf32> to vector<8x128xf32>
    %cst = arith.constant 0.899999976 : f32
    %6 = vector.broadcast %cst : f32 to vector<8x128xf32>
    %7 = arith.mulf %3, %6 : vector<8x128xf32>
    %8 = arith.addf %7, %5 : vector<8x128xf32>
    %cst_5 = arith.constant 1.000000e+00 : f32
    %9 = vector.broadcast %cst_5 : f32 to vector<8x128xf32>
    %10 = arith.cmpf ogt, %8, %9 : vector<8x128xf32>
    %cst_6 = arith.constant 1.000000e+00 : f32
    %11 = vector.broadcast %cst_6 : f32 to vector<8x128xf32>
    %12 = arith.subf %8, %11 : vector<8x128xf32>
    %13 = arith.select %10, %12, %8 : vector<8x128xi1>, vector<8x128xf32>
    %14 = arith.extui %10 : vector<8x128xi1> to vector<8x128xi32>
    %15 = arith.sitofp %14 : vector<8x128xi32> to vector<8x128xf32>
    %c0_7 = arith.constant 0 : index
    %c0_8 = arith.constant 0 : index
    %c0_9 = arith.constant 0 : index
    %16 = vector.load %arg4[%c0_7, %c0_8, %c0_9] : memref<8x8x128xf32, #tpu.memory_space<vmem>>, vector<1x8x128xf32>
    %17 = vector.shape_cast %16 : vector<1x8x128xf32> to vector<8x128xf32>
    %18 = vector.shape_cast %15 : vector<8x128xf32> to vector<1x8x128xf32>
    tpu.vector_store %arg4[%c0_7, %c0_8, %c0_9], %18 {strides = array<i32>} : memref<8x8x128xf32, #tpu.memory_space<vmem>>, vector<1x8x128xf32>,
    %c1 = arith.constant 1 : index
    %c0_10 = arith.constant 0 : index
    %c0_11 = arith.constant 0 : index
    %19 = vector.load %arg2[%c1, %c0_10, %c0_11] : memref<8x8x128xf32, #tpu.memory_space<vmem>>, vector<1x8x128xf32>
    %20 = vector.shape_cast %19 : vector<1x8x128xf32> to vector<8x128xf32>
    %cst_12 = arith.constant 0.899999976 : f32
    %21 = vector.broadcast %cst_12 : f32 to vector<8x128xf32>
    %22 = arith.mulf %13, %21 : vector<8x128xf32>
    %23 = arith.addf %22, %20 : vector<8x128xf32>
    %cst_13 = arith.constant 1.000000e+00 : f32
    %24 = vector.broadcast %cst_13 : f32 to vector<8x128xf32>
    %25 = arith.cmpf ogt, %23, %24 : vector<8x128xf32>
    %cst_14 = arith.constant 1.000000e+00 : f32
    %26 = vector.broadcast %cst_14 : f32 to vector<8x128xf32>
    %27 = arith.subf %23, %26 : vector<8x128xf32>
    %28 = arith.select %25, %27, %23 : vector<8x128xi1>, vector<8x128xf32>
    %29 = arith.extui %25 : vector<8x128xi1> to vector<8x128xi32>
    %30 = arith.sitofp %29 : vector<8x128xi32> to vector<8x128xf32>
    %c1_15 = arith.constant 1 : index
    %c0_16 = arith.constant 0 : index
    %c0_17 = arith.constant 0 : index
    %31 = vector.load %arg4[%c1_15, %c0_16, %c0_17] : memref<8x8x128xf32, #tpu.memory_space<vmem>>, vector<1x8x128xf32>
    %32 = vector.shape_cast %31 : vector<1x8x128xf32> to vector<8x128xf32>
    %33 = vector.shape_cast %30 : vector<8x128xf32> to vector<1x8x128xf32>
    tpu.vector_store %arg4[%c1_15, %c0_16, %c0_17], %33 {strides = array<i32>} : memref<8x8x128xf32, #tpu.memory_space<vmem>>, vector<1x8x128xf32>,
    %c2 = arith.constant 2 : index
    %c0_18 = arith.constant 0 : index
    %c0_19 = arith.constant 0 : index
    %34 = vector.load %arg2[%c2, %c0_18, %c0_19] : memref<8x8x128xf32, #tpu.memory_space<vmem>>, vector<1x8x128xf32>
    %35 = vector.shape_cast %34 : vector<1x8x128xf32> to vector<8x128xf32>
    %cst_20 = arith.constant 0.899999976 : f32
    %36 = vector.broadcast %cst_20 : f32 to vector<8x128xf32>
    %37 = arith.mulf %28, %36 : vector<8x128xf32>
    %38 = arith.addf %37, %35 : vector<8x128xf32>
    %cst_21 = arith.constant 1.000000e+00 : f32
    %39 = vector.broadcast %cst_21 : f32 to vector<8x128xf32>
    %40 = arith.cmpf ogt, %38, %39 : vector<8x128xf32>
    %cst_22 = arith.constant 1.000000e+00 : f32
    %41 = vector.broadcast %cst_22 : f32 to vector<8x128xf32>
    %42 = arith.subf %38, %41 : vector<8x128xf32>
    %43 = arith.select %40, %42, %38 : vector<8x128xi1>, vector<8x128xf32>
    %44 = arith.extui %40 : vector<8x128xi1> to vector<8x128xi32>
    %45 = arith.sitofp %44 : vector<8x128xi32> to vector<8x128xf32>
    %c2_23 = arith.constant 2 : index
    %c0_24 = arith.constant 0 : index
    %c0_25 = arith.constant 0 : index
    %46 = vector.load %arg4[%c2_23, %c0_24, %c0_25] : memref<8x8x128xf32, #tpu.memory_space<vmem>>, vector<1x8x128xf32>
    %47 = vector.shape_cast %46 : vector<1x8x128xf32> to vector<8x128xf32>
    %48 = vector.shape_cast %45 : vector<8x128xf32> to vector<1x8x128xf32>
    tpu.vector_store %arg4[%c2_23, %c0_24, %c0_25], %48 {strides = array<i32>} : memref<8x8x128xf32, #tpu.memory_space<vmem>>, vector<1x8x128xf32>,
    %c3 = arith.constant 3 : index
    %c0_26 = arith.constant 0 : index
    %c0_27 = arith.constant 0 : index
    %49 = vector.load %arg2[%c3, %c0_26, %c0_27] : memref<8x8x128xf32, #tpu.memory_space<vmem>>, vector<1x8x128xf32>
    %50 = vector.shape_cast %49 : vector<1x8x128xf32> to vector<8x128xf32>
    %cst_28 = arith.constant 0.899999976 : f32
    %51 = vector.broadcast %cst_28 : f32 to vector<8x128xf32>
    %52 = arith.mulf %43, %51 : vector<8x128xf32>
    %53 = arith.addf %52, %50 : vector<8x128xf32>
    %cst_29 = arith.constant 1.000000e+00 : f32
    %54 = vector.broadcast %cst_29 : f32 to vector<8x128xf32>
    %55 = arith.cmpf ogt, %53, %54 : vector<8x128xf32>
    %cst_30 = arith.constant 1.000000e+00 : f32
    %56 = vector.broadcast %cst_30 : f32 to vector<8x128xf32>
    %57 = arith.subf %53, %56 : vector<8x128xf32>
    %58 = arith.select %55, %57, %53 : vector<8x128xi1>, vector<8x128xf32>
    %59 = arith.extui %55 : vector<8x128xi1> to vector<8x128xi32>
    %60 = arith.sitofp %59 : vector<8x128xi32> to vector<8x128xf32>
    %c3_31 = arith.constant 3 : index
    %c0_32 = arith.constant 0 : index
    %c0_33 = arith.constant 0 : index
    %61 = vector.load %arg4[%c3_31, %c0_32, %c0_33] : memref<8x8x128xf32, #tpu.memory_space<vmem>>, vector<1x8x128xf32>
    %62 = vector.shape_cast %61 : vector<1x8x128xf32> to vector<8x128xf32>
    %63 = vector.shape_cast %60 : vector<8x128xf32> to vector<1x8x128xf32>
    tpu.vector_store %arg4[%c3_31, %c0_32, %c0_33], %63 {strides = array<i32>} : memref<8x8x128xf32, #tpu.memory_space<vmem>>, vector<1x8x128xf32>,
    %c4 = arith.constant 4 : index
    %c0_34 = arith.constant 0 : index
    %c0_35 = arith.constant 0 : index
    %64 = vector.load %arg2[%c4, %c0_34, %c0_35] : memref<8x8x128xf32, #tpu.memory_space<vmem>>, vector<1x8x128xf32>
    %65 = vector.shape_cast %64 : vector<1x8x128xf32> to vector<8x128xf32>
    %cst_36 = arith.constant 0.899999976 : f32
    %66 = vector.broadcast %cst_36 : f32 to vector<8x128xf32>
    %67 = arith.mulf %58, %66 : vector<8x128xf32>
    %68 = arith.addf %67, %65 : vector<8x128xf32>
    %cst_37 = arith.constant 1.000000e+00 : f32
    %69 = vector.broadcast %cst_37 : f32 to vector<8x128xf32>
    %70 = arith.cmpf ogt, %68, %69 : vector<8x128xf32>
    %cst_38 = arith.constant 1.000000e+00 : f32
    %71 = vector.broadcast %cst_38 : f32 to vector<8x128xf32>
    %72 = arith.subf %68, %71 : vector<8x128xf32>
    %73 = arith.select %70, %72, %68 : vector<8x128xi1>, vector<8x128xf32>
    %74 = arith.extui %70 : vector<8x128xi1> to vector<8x128xi32>
    %75 = arith.sitofp %74 : vector<8x128xi32> to vector<8x128xf32>
    %c4_39 = arith.constant 4 : index
    %c0_40 = arith.constant 0 : index
    %c0_41 = arith.constant 0 : index
    %76 = vector.load %arg4[%c4_39, %c0_40, %c0_41] : memref<8x8x128xf32, #tpu.memory_space<vmem>>, vector<1x8x128xf32>
    %77 = vector.shape_cast %76 : vector<1x8x128xf32> to vector<8x128xf32>
    %78 = vector.shape_cast %75 : vector<8x128xf32> to vector<1x8x128xf32>
    tpu.vector_store %arg4[%c4_39, %c0_40, %c0_41], %78 {strides = array<i32>} : memref<8x8x128xf32, #tpu.memory_space<vmem>>, vector<1x8x128xf32>,
    %c5 = arith.constant 5 : index
    %c0_42 = arith.constant 0 : index
    %c0_43 = arith.constant 0 : index
    %79 = vector.load %arg2[%c5, %c0_42, %c0_43] : memref<8x8x128xf32, #tpu.memory_space<vmem>>, vector<1x8x128xf32>
    %80 = vector.shape_cast %79 : vector<1x8x128xf32> to vector<8x128xf32>
    %cst_44 = arith.constant 0.899999976 : f32
    %81 = vector.broadcast %cst_44 : f32 to vector<8x128xf32>
    %82 = arith.mulf %73, %81 : vector<8x128xf32>
    %83 = arith.addf %82, %80 : vector<8x128xf32>
    %cst_45 = arith.constant 1.000000e+00 : f32
    %84 = vector.broadcast %cst_45 : f32 to vector<8x128xf32>
    %85 = arith.cmpf ogt, %83, %84 : vector<8x128xf32>
    %cst_46 = arith.constant 1.000000e+00 : f32
    %86 = vector.broadcast %cst_46 : f32 to vector<8x128xf32>
    %87 = arith.subf %83, %86 : vector<8x128xf32>
    %88 = arith.select %85, %87, %83 : vector<8x128xi1>, vector<8x128xf32>
    %89 = arith.extui %85 : vector<8x128xi1> to vector<8x128xi32>
    %90 = arith.sitofp %89 : vector<8x128xi32> to vector<8x128xf32>
    %c5_47 = arith.constant 5 : index
    %c0_48 = arith.constant 0 : index
    %c0_49 = arith.constant 0 : index
    %91 = vector.load %arg4[%c5_47, %c0_48, %c0_49] : memref<8x8x128xf32, #tpu.memory_space<vmem>>, vector<1x8x128xf32>
    %92 = vector.shape_cast %91 : vector<1x8x128xf32> to vector<8x128xf32>
    %93 = vector.shape_cast %90 : vector<8x128xf32> to vector<1x8x128xf32>
    tpu.vector_store %arg4[%c5_47, %c0_48, %c0_49], %93 {strides = array<i32>} : memref<8x8x128xf32, #tpu.memory_space<vmem>>, vector<1x8x128xf32>,
    %c6 = arith.constant 6 : index
    %c0_50 = arith.constant 0 : index
    %c0_51 = arith.constant 0 : index
    %94 = vector.load %arg2[%c6, %c0_50, %c0_51] : memref<8x8x128xf32, #tpu.memory_space<vmem>>, vector<1x8x128xf32>
    %95 = vector.shape_cast %94 : vector<1x8x128xf32> to vector<8x128xf32>
    %cst_52 = arith.constant 0.899999976 : f32
    %96 = vector.broadcast %cst_52 : f32 to vector<8x128xf32>
    %97 = arith.mulf %88, %96 : vector<8x128xf32>
    %98 = arith.addf %97, %95 : vector<8x128xf32>
    %cst_53 = arith.constant 1.000000e+00 : f32
    %99 = vector.broadcast %cst_53 : f32 to vector<8x128xf32>
    %100 = arith.cmpf ogt, %98, %99 : vector<8x128xf32>
    %cst_54 = arith.constant 1.000000e+00 : f32
    %101 = vector.broadcast %cst_54 : f32 to vector<8x128xf32>
    %102 = arith.subf %98, %101 : vector<8x128xf32>
    %103 = arith.select %100, %102, %98 : vector<8x128xi1>, vector<8x128xf32>
    %104 = arith.extui %100 : vector<8x128xi1> to vector<8x128xi32>
    %105 = arith.sitofp %104 : vector<8x128xi32> to vector<8x128xf32>
    %c6_55 = arith.constant 6 : index
    %c0_56 = arith.constant 0 : index
    %c0_57 = arith.constant 0 : index
    %106 = vector.load %arg4[%c6_55, %c0_56, %c0_57] : memref<8x8x128xf32, #tpu.memory_space<vmem>>, vector<1x8x128xf32>
    %107 = vector.shape_cast %106 : vector<1x8x128xf32> to vector<8x128xf32>
    %108 = vector.shape_cast %105 : vector<8x128xf32> to vector<1x8x128xf32>
    tpu.vector_store %arg4[%c6_55, %c0_56, %c0_57], %108 {strides = array<i32>} : memref<8x8x128xf32, #tpu.memory_space<vmem>>, vector<1x8x128xf32>,
    %c7 = arith.constant 7 : index
    %c0_58 = arith.constant 0 : index
    %c0_59 = arith.constant 0 : index
    %109 = vector.load %arg2[%c7, %c0_58, %c0_59] : memref<8x8x128xf32, #tpu.memory_space<vmem>>, vector<1x8x128xf32>
    %110 = vector.shape_cast %109 : vector<1x8x128xf32> to vector<8x128xf32>
    %cst_60 = arith.constant 0.899999976 : f32
    %111 = vector.broadcast %cst_60 : f32 to vector<8x128xf32>
    %112 = arith.mulf %103, %111 : vector<8x128xf32>
    %113 = arith.addf %112, %110 : vector<8x128xf32>
    %cst_61 = arith.constant 1.000000e+00 : f32
    %114 = vector.broadcast %cst_61 : f32 to vector<8x128xf32>
    %115 = arith.cmpf ogt, %113, %114 : vector<8x128xf32>
    %cst_62 = arith.constant 1.000000e+00 : f32
    %116 = vector.broadcast %cst_62 : f32 to vector<8x128xf32>
    %117 = arith.subf %113, %116 : vector<8x128xf32>
    %118 = arith.select %115, %117, %113 : vector<8x128xi1>, vector<8x128xf32>
    %119 = arith.extui %115 : vector<8x128xi1> to vector<8x128xi32>
    %120 = arith.sitofp %119 : vector<8x128xi32> to vector<8x128xf32>
    %c7_63 = arith.constant 7 : index
    %c0_64 = arith.constant 0 : index
    %c0_65 = arith.constant 0 : index
    %121 = vector.load %arg4[%c7_63, %c0_64, %c0_65] : memref<8x8x128xf32, #tpu.memory_space<vmem>>, vector<1x8x128xf32>
    %122 = vector.shape_cast %121 : vector<1x8x128xf32> to vector<8x128xf32>
    %123 = vector.shape_cast %120 : vector<8x128xf32> to vector<1x8x128xf32>
    tpu.vector_store %arg4[%c7_63, %c0_64, %c0_65], %123 {strides = array<i32>} : memref<8x8x128xf32, #tpu.memory_space<vmem>>, vector<1x8x128xf32>,
    %c0_66 = arith.constant 0 : index
    %c0_67 = arith.constant 0 : index
    %124 = vector.load %arg5[%c0_66, %c0_67] : memref<8x128xf32, #tpu.memory_space<vmem>>, vector<8x128xf32>
    tpu.vector_store %arg5[%c0_66, %c0_67], %118 {strides = array<i32>} : memref<8x128xf32, #tpu.memory_space<vmem>>, vector<8x128xf32>,
    return
  }
  func.func @transform_0(%arg0: i32, %arg1: i32) -> (i32, i32, i32) {
    %c0_i32 = arith.constant 0 : i32
    %c0_i32_0 = arith.constant 0 : i32
    return %arg1, %arg0, %c0_i32 : i32, i32, i32
  }
  func.func @transform_1(%arg0: i32, %arg1: i32) -> (i32, i32) {
    %c0_i32 = arith.constant 0 : i32
    %c0_i32_0 = arith.constant 0 : i32
    return %arg0, %c0_i32 : i32, i32
  }
  func.func @transform_2(%arg0: i32, %arg1: i32) -> (i32, i32, i32) {
    %c0_i32 = arith.constant 0 : i32
    %c0_i32_0 = arith.constant 0 : i32
    return %arg1, %arg0, %c0_i32 : i32, i32, i32
  }
  func.func @transform_3(%arg0: i32, %arg1: i32) -> (i32, i32) {
    %c0_i32 = arith.constant 0 : i32
    %c0_i32_0 = arith.constant 0 : i32
    return %arg0, %c0_i32 : i32, i32
  }
}

</mosaic_0001>

<bundles_post_ra>
// kernel: _run_flat.1
= control target key start
LH: loop header
LB: loop body
LE: loop exit
PB: predicated region body
PF: predicated region fallthrough
CT: control target
= control target key end

     0   :  { %v146_v5 = vmov 0.0   ;;  %s221_s1 = inlined_call_operand.vmem [shape: f32[8,128], index: 1, kind: input, shape index: {}, may-alias: {1,3}]   ;;  %s222_s0 = inlined_call_operand.vmem [shape: f32[8,8,128], index: 0, kind: input, shape index: {}]   ;;  %s223_s2 = inlined_call_operand.vmem [shape: f32[8,8,128], index: 2, kind: output, shape index: {0}]   ;;  %s224_s3 = inlined_call_operand.vmem [shape: f32[8,128], index: 3, kind: output, shape index: {1}, may-alias: {1,3}]  }
   0x1   :  { %v17_v0 = vld [vmem:[%s221_s1] sm:$0xff]  ;;  %v117_v8 = vld [vmem:[%s222_s0 + $0x8] sm:$0xff]  ;;  %v121_v14 = vld [vmem:[%s222_s0 + $0x10] sm:$0xff] }
   0x2   :  { %v20_v1 = vld [vmem:[%s222_s0] sm:$0xff]  ;;  %v21_v2 = vmul.f32 0.9, %v17_v0  ;;  %v125_v20 = vld [vmem:[%s222_s0 + $0x18] sm:$0xff]  ;;  %v133_v32 = vld [vmem:[%s222_s0 + $0x28] sm:$0xff] }
   0x3   :  { %v129_v26 = vld [vmem:[%s222_s0 + $0x20] sm:$0xff]  ;;  %v137_v38 = vld [vmem:[%s222_s0 + $0x30] sm:$0xff]  ;;  %v141_v44 = vld [vmem:[%s222_s0 + $0x38] sm:$0xff] }
   0x4   :  { %v22_v3 = vadd.f32 %v21_v2, %v20_v1 }
   0x6   :  { %vm23_vm0 = vcmp.gt.f32.partialorder %v22_v3, 1.0  ;;  %v115_v4 = vadd.f32 -1.0, %v22_v3 }
   0x7   :  { %v116_v6 = vsel %vm23_vm0, 1.0, %v146_v5 }
   0x8   :  { %v25_v7 = vsel %vm23_vm0, %v115_v4, %v22_v3  ;;  %28 = vst [vmem:[%s223_s2] sm:$0xff] %v116_v6 }
   0x9   :  { %v31_v9 = vmul.f32 0.9, %v25_v7 }
   0xb   :  { %v32_v10 = vadd.f32 %v117_v8, %v31_v9 }
   0xd   :  { %vm33_vm1 = vcmp.gt.f32.partialorder %v32_v10, 1.0  ;;  %v118_v11 = vadd.f32 -1.0, %v32_v10 }
   0xe   :  { %v119_v12 = vsel %vm33_vm1, 1.0, %v146_v5 }
   0xf   :  { %v35_v13 = vsel %vm33_vm1, %v118_v11, %v32_v10  ;;  %120 = vst [vmem:[%s223_s2 + $0x8] sm:$0xff] %v119_v12 }
  0x10   :  { %v42_v15 = vmul.f32 0.9, %v35_v13 }
  0x12   :  { %v43_v16 = vadd.f32 %v121_v14, %v42_v15 }
  0x14   :  { %vm44_vm2 = vcmp.gt.f32.partialorder %v43_v16, 1.0  ;;  %v122_v17 = vadd.f32 -1.0, %v43_v16 }
  0x15   :  { %v123_v18 = vsel %vm44_vm2, 1.0, %v146_v5 }
  0x16   :  { %v46_v19 = vsel %vm44_vm2, %v122_v17, %v43_v16  ;;  %124 = vst [vmem:[%s223_s2 + $0x10] sm:$0xff] %v123_v18 }
  0x17   :  { %v53_v21 = vmul.f32 0.9, %v46_v19 }
  0x19   :  { %v54_v22 = vadd.f32 %v125_v20, %v53_v21 }
  0x1b   :  { %vm55_vm3 = vcmp.gt.f32.partialorder %v54_v22, 1.0  ;;  %v126_v23 = vadd.f32 -1.0, %v54_v22 }
  0x1c   :  { %v127_v24 = vsel %vm55_vm3, 1.0, %v146_v5 }
  0x1d   :  { %v57_v25 = vsel %vm55_vm3, %v126_v23, %v54_v22  ;;  %128 = vst [vmem:[%s223_s2 + $0x18] sm:$0xff] %v127_v24 }
  0x1e   :  { %v64_v27 = vmul.f32 0.9, %v57_v25 }
  0x20   :  { %v65_v28 = vadd.f32 %v129_v26, %v64_v27 }
  0x22   :  { %vm66_vm4 = vcmp.gt.f32.partialorder %v65_v28, 1.0  ;;  %v130_v29 = vadd.f32 -1.0, %v65_v28 }
  0x23   :  { %v131_v30 = vsel %vm66_vm4, 1.0, %v146_v5 }
  0x24   :  { %v68_v31 = vsel %vm66_vm4, %v130_v29, %v65_v28  ;;  %132 = vst [vmem:[%s223_s2 + $0x20] sm:$0xff] %v131_v30 }
  0x25   :  { %v75_v33 = vmul.f32 0.9, %v68_v31 }
  0x27   :  { %v76_v34 = vadd.f32 %v133_v32, %v75_v33 }
  0x29   :  { %vm77_vm5 = vcmp.gt.f32.partialorder %v76_v34, 1.0  ;;  %v134_v35 = vadd.f32 -1.0, %v76_v34 }
  0x2a   :  { %v135_v36 = vsel %vm77_vm5, 1.0, %v146_v5 }
  0x2b   :  { %v79_v37 = vsel %vm77_vm5, %v134_v35, %v76_v34  ;;  %136 = vst [vmem:[%s223_s2 + $0x28] sm:$0xff] %v135_v36 }
  0x2c   :  { %v86_v39 = vmul.f32 0.9, %v79_v37 }
  0x2e   :  { %v87_v40 = vadd.f32 %v137_v38, %v86_v39 }
  0x30   :  { %vm88_vm6 = vcmp.gt.f32.partialorder %v87_v40, 1.0  ;;  %v138_v41 = vadd.f32 -1.0, %v87_v40 }
  0x31   :  { %v139_v42 = vsel %vm88_vm6, 1.0, %v146_v5 }
  0x32   :  { %v90_v43 = vsel %vm88_vm6, %v138_v41, %v87_v40  ;;  %140 = vst [vmem:[%s223_s2 + $0x30] sm:$0xff] %v139_v42 }
  0x33   :  { %v97_v45 = vmul.f32 0.9, %v90_v43 }
  0x35   :  { %v98_v46 = vadd.f32 %v141_v44, %v97_v45 }
  0x37   :  { %vm99_vm7 = vcmp.gt.f32.partialorder %v98_v46, 1.0  ;;  %v142_v47 = vadd.f32 -1.0, %v98_v46 }
  0x38   :  { %v143_v48 = vsel %vm99_vm7, 1.0, %v146_v5 }
  0x39   :  { %144 = vst [vmem:[%s223_s2 + $0x38] sm:$0xff] %v143_v48  ;;  %v101_v49 = vsel %vm99_vm7, %v142_v47, %v98_v46 }
  0x3a   :  { %106 = vst [vmem:[%s224_s3] sm:$0xff] %v101_v49 }

</bundles_post_ra>
